<compile_context>
chip_gen: v5e
topology: v5e:2x2
jax: 0.10.0
libtpu: 0.0.40
codegen_flags: <defaults>
</compile_context>

<pallas_src>
import numpy as np
import jax
import jax.numpy as jnp
from jax.experimental import pallas as pl
from jax.experimental.pallas import tpu as pltpu

_C = 3              # real channel count; output is emitted as (3, H*W) directly
_TILE_CAP = 4096    # max lanes per grid step (output block 48 KiB, ample VMEM headroom)
_LANE_CHUNK = 512   # in-kernel sub-tile: keeps the (Np x chunk) one-hot register-resident


def _round_up(x, m):
    return ((x + m - 1) // m) * m


def _choose_tiling(hw):
    """Pick (tile_hw, hw_pad, num_tiles); tile_hw is always a multiple of 128."""
    if hw <= 256:
        tile = _round_up(hw, 128)                # tiny image: one block, minimal overhead
    elif hw <= _TILE_CAP:
        tile = _round_up((hw + 1) // 2, 128)     # >= 2 parallel steps -> v7x megacore split
    else:
        tile = None
        t = 128
        while t <= _TILE_CAP:                    # exact 128-multiple divisor: no output pad
            if hw % t == 0:
                tile = t
            t += 128
        if tile is None:                         # no divisor: pad hw up instead of blowing VMEM
            tile = (_TILE_CAP // 128) * 128
    hw_pad = _round_up(hw, tile)
    return tile, hw_pad, hw_pad // tile


def _scatter_kernel(counts_ref, flat_ref, pts_ref, img_ref):
    """One HW-tile of the scatter as a transposed one-hot matmul.

    counts_ref : (num_tiles,) SMEM int32  points landing in each HW tile (prefetched)
    flat_ref   : (Np, 1)      int32       flat index (h*W + w) per point; padding = -1
    pts_ref    : (3,  Np)     f32         point features, channels on the sublane axis
    img_ref    : (3,  TILE_HW) f32        output tile of the flattened (3, H*W) image
    """
    i = pl.program_id(0)
    tile_hw = img_ref.shape[1]

    @pl.when(counts_ref[i] == 0)
    def _zero():                                 # empty tile: skip all compare/dot work
        img_ref[...] = jnp.zeros_like(img_ref)

    @pl.when(counts_ref[i] != 0)
    def _scatter():
        local = flat_ref[...] - i * tile_hw      # (Np, 1) int32; padded points stay negative
        for start in range(0, tile_hw, _LANE_CHUNK):
            chunk = min(_LANE_CHUNK, tile_hw - start)
            lanes = jax.lax.broadcasted_iota(jnp.int32, (1, chunk), 1)
            # NOTE: duplicate positions SUM here, while the PyTorch assignment is
            # last-write-wins; the host layout guarantees unique cells.
            onehot = (lanes == (local - start)).astype(jnp.float32)   # (Np, chunk)
            img_ref[:, start:start + chunk] = jnp.dot(
                pts_ref[...], onehot, preferred_element_type=jnp.float32)


def graph_draw_scatter(points, pos_np, size2d):
    """img_2d[0, pos[:,0], pos[:,1]] = points  (then NCHW), done in Pallas."""
    n, c = points.shape
    assert c == _C
    npad = _round_up(max(n, 8), 8)               # sublane granularity only (not 128)
    hw = size2d * size2d
    tile_hw, hw_pad, num_tiles = _choose_tiling(hw)

    # pos is host-computed -> flat index and per-tile occupancy counts in numpy.
    flat_np = (pos_np[:, 0].astype(np.int64) * size2d + pos_np[:, 1]).astype(np.int32)
    counts_np = np.bincount(flat_np // tile_hw, minlength=num_tiles).astype(np.int32)

    pts_p = jnp.zeros((_C, npad), jnp.float32).at[:, :n].set(points.T)
    flat_p = jnp.full((npad, 1), -1, jnp.int32).at[:n, 0].set(jnp.asarray(flat_np))
    counts = jnp.asarray(counts_np)

    cost = pl.CostEstimate(
        flops=2 * hw_pad * npad * _C,
        transcendentals=0,
        bytes_accessed=4 * (npad + _C * npad + _C * hw_pad + num_tiles),
    )

    out = pl.pallas_call(
        _scatter_kernel,
        out_shape=jax.ShapeDtypeStruct((_C, hw_pad), jnp.float32),
        grid_spec=pltpu.PrefetchScalarGridSpec(
            num_scalar_prefetch=1,
            grid=(num_tiles,),
            in_specs=[
                pl.BlockSpec((npad, 1), lambda i, counts: (0, 0)),   # full-array blocks
                pl.BlockSpec((_C, npad), lambda i, counts: (0, 0)),
            ],
            out_specs=pl.BlockSpec((_C, tile_hw), lambda i, counts: (0, i)),
        ),
        compiler_params=pltpu.CompilerParams(
            dimension_semantics=("parallel",),       # megacore split on v7x
            vmem_limit_bytes=32 * 1024 * 1024,       # safe on v5e/v6e/v7x
        ),
        cost_estimate=cost,
    )(counts, flat_p, pts_p)

    if hw_pad != hw:                                 # only for hw with no 128-mult divisor
        out = out[:, :hw]
    img_2d = out.reshape(_C, size2d, size2d)[None]   # (1, C, H, W)  NCHW, no transpose needed
    return img_2d


def _host_layout_stub(points_np, size2d):
    """Deterministic stand-in for GPGL2_seg's graph layout.

    # TODO(synk): the real GPGL2_seg (sklearn KMeans, networkx spring_layout,
    # iterative overlap-push / graph_cut loops) is host-side, data-dependent
    # numpy code with no clean Pallas equivalent; replaced by a deterministic
    # unique-grid-cell assignment so the scatter semantics match.
    """
    n = points_np.shape[0]
    assert n <= size2d * size2d
    order = np.argsort(points_np[:, 0], kind="stable")
    pos = np.zeros((n, 2), dtype=np.int32)
    pos[order, 0] = np.arange(n) // size2d
    pos[order, 1] = np.arange(n) % size2d
    return pos


def graph_draw_forward(pc1, size2d):
    """Mirror of GraphDraw.forward: pc1 (1, 3, N) -> (img_2d (1,3,s,s), [pos])."""
    assert pc1.shape[0] == 1, "Batch size must be one"
    points = jnp.transpose(pc1, (0, 2, 1))[0]               # (N, 3)
    pos_np = _host_layout_stub(np.asarray(points), size2d)  # host-side layout
    img_2d = graph_draw_scatter(points, pos_np, size2d)     # Pallas scatter
    return img_2d, [pos_np]


if __name__ == "__main__":
    num_pts = 64   # GraphDraw(num_pts=64, s=16, normal_channel=False)
    s = 16
    key = jax.random.PRNGKey(0)
    pc1 = jax.random.normal(key, (1, 3, num_pts), dtype=jnp.float32)

    img_2d, (pos_np,) = graph_draw_forward(pc1, s)
    img_2d = jax.block_until_ready(img_2d)

    # pure-numpy reference of the forward's scatter
    pts_np = np.asarray(jnp.transpose(pc1, (0, 2, 1))[0])   # (N, 3)
    ref = np.zeros((s, s, 3), np.float32)
    ref[pos_np[:, 0], pos_np[:, 1]] = pts_np
    ref = ref.transpose(2, 0, 1)[None]                      # (1, 3, s, s)

    assert img_2d.shape == (1, 3, s, s) and img_2d.dtype == jnp.float32
    np.testing.assert_allclose(np.asarray(img_2d), ref, atol=1e-5)
    print("KERNEL_OK")
</pallas_src>

<mosaic_0001>
module attributes {stable_mosaic.version = 11 : i64} {
  func.func @_scatter_kernel(%arg0: i32, %arg1: memref<1xi32, #tpu.memory_space<smem>>, %arg2: memref<64x1xi32, #tpu.memory_space<vmem>>, %arg3: memref<3x64xf32, #tpu.memory_space<vmem>>, %arg4: memref<3x256xf32, #tpu.memory_space<vmem>>) attributes {dimension_semantics = [#tpu.dimension_semantics<parallel>], iteration_bounds = array<i64: 1>, scalar_prefetch = 1 : i64, scratch_operands = 0 : i64, tpu.core_type = #tpu.core_type<tc>, window_params = [{pipeline_mode = #tpu.pipeline_mode<synchronous>, transform_indices = @transform_0, window_bounds = array<i64: 64, 1>}, {pipeline_mode = #tpu.pipeline_mode<synchronous>, transform_indices = @transform_1, window_bounds = array<i64: 3, 64>}, {transform_indices = @transform_2, window_bounds = array<i64: 3, 256>}]} {
    %0 = arith.index_cast %arg0 : i32 to index
    %1 = memref.load %arg1[%0] : memref<1xi32, #tpu.memory_space<smem>>
    %c0_i32 = arith.constant 0 : i32
    %2 = arith.cmpi eq, %1, %c0_i32 : i32
    %3 = arith.extui %2 : i1 to i32
    %c0_i32_0 = arith.constant 0 : i32
    %4 = arith.cmpi ne, %3, %c0_i32_0 : i32
    scf.if %4 {
      %cst = arith.constant 0.000000e+00 : f32
      %10 = vector.broadcast %cst : f32 to vector<3x256xf32>
      %c0 = arith.constant 0 : index
      %c0_3 = arith.constant 0 : index
      %11 = vector.load %arg4[%c0, %c0_3] : memref<3x256xf32, #tpu.memory_space<vmem>>, vector<3x256xf32>
      tpu.vector_store %arg4[%c0, %c0_3], %10 {strides = array<i32>} : memref<3x256xf32, #tpu.memory_space<vmem>>, vector<3x256xf32>,
    } else {
    }
    %5 = arith.index_cast %arg0 : i32 to index
    %6 = memref.load %arg1[%5] : memref<1xi32, #tpu.memory_space<smem>>
    %c0_i32_1 = arith.constant 0 : i32
    %7 = arith.cmpi ne, %6, %c0_i32_1 : i32
    %8 = arith.extui %7 : i1 to i32
    %c0_i32_2 = arith.constant 0 : i32
    %9 = arith.cmpi ne, %8, %c0_i32_2 : i32
    scf.if %9 {
      %c0 = arith.constant 0 : index
      %c0_3 = arith.constant 0 : index
      %10 = vector.load %arg2[%c0, %c0_3] : memref<64x1xi32, #tpu.memory_space<vmem>>, vector<64x1xi32>
      %c256_i32 = arith.constant 256 : i32
      %11 = arith.muli %arg0, %c256_i32 : i32
      %12 = vector.broadcast %11 : i32 to vector<64x1xi32>
      %13 = arith.subi %10, %12 : vector<64x1xi32>
      %14 = tpu.iota {dimensions = array<i32: 1>} : vector<1x256xi32>
      %c0_i32_4 = arith.constant 0 : i32
      %15 = vector.broadcast %c0_i32_4 : i32 to vector<64x1xi32>
      %16 = arith.subi %13, %15 : vector<64x1xi32>
      %17 = vector.broadcast %14 : vector<1x256xi32> to vector<64x256xi32>
      %18 = vector.broadcast %16 : vector<64x1xi32> to vector<64x256xi32>
      %19 = arith.cmpi eq, %17, %18 : vector<64x256xi32>
      %20 = arith.extui %19 : vector<64x256xi1> to vector<64x256xi32>
      %21 = arith.sitofp %20 : vector<64x256xi32> to vector<64x256xf32>
      %c0_5 = arith.constant 0 : index
      %c0_6 = arith.constant 0 : index
      %22 = vector.load %arg3[%c0_5, %c0_6] : memref<3x64xf32, #tpu.memory_space<vmem>>, vector<3x64xf32>
      %cst = arith.constant dense<0.000000e+00> : vector<3x256xf32>
      %23 = tpu.matmul %22, %21, %cst {dimension_numbers = #tpu.dot_dimension_numbers<[1], [0], [0], [1], [0, 0, 1, 1], [], []>} : vector<3x64xf32>, vector<64x256xf32>, vector<3x256xf32> -> vector<3x256xf32>
      %c0_7 = arith.constant 0 : index
      %c0_8 = arith.constant 0 : index
      %24 = vector.load %arg4[%c0_7, %c0_8] : memref<3x256xf32, #tpu.memory_space<vmem>>, vector<3x256xf32>
      tpu.vector_store %arg4[%c0_7, %c0_8], %23 {strides = array<i32>} : memref<3x256xf32, #tpu.memory_space<vmem>>, vector<3x256xf32>,
    } else {
    }
    return
  }
  func.func @transform_0(%arg0: i32, %arg1: memref<1xi32, #tpu.memory_space<smem>>) -> (i32, i32) {
    %c0_i32 = arith.constant 0 : i32
    %c0_i32_0 = arith.constant 0 : i32
    %c0_i32_1 = arith.constant 0 : i32
    return %c0_i32, %c0_i32_0 : i32, i32
  }
  func.func @transform_1(%arg0: i32, %arg1: memref<1xi32, #tpu.memory_space<smem>>) -> (i32, i32) {
    %c0_i32 = arith.constant 0 : i32
    %c0_i32_0 = arith.constant 0 : i32
    %c0_i32_1 = arith.constant 0 : i32
    return %c0_i32, %c0_i32_0 : i32, i32
  }
  func.func @transform_2(%arg0: i32, %arg1: memref<1xi32, #tpu.memory_space<smem>>) -> (i32, i32) {
    %c0_i32 = arith.constant 0 : i32
    %c0_i32_0 = arith.constant 0 : i32
    return %c0_i32, %arg0 : i32, i32
  }
}

</mosaic_0001>

<bundles_post_ra>
// kernel: tpu_custom_call.1
= control target key start
LH: loop header
LB: loop body
LE: loop exit
PB: predicated region body
PF: predicated region fallthrough
CT: control target
= control target key end

     0   :  { %s312_s0 = inlined_call_operand.<no memory space> [shape: s32[1], index: 0, kind: input, shape index: {}]   ;;  %s313_s1 = inlined_call_operand.vmem [shape: s32[64,1], index: 1, kind: input, shape index: {}]   ;;  %s314_s2 = inlined_call_operand.vmem [shape: f32[3,64], index: 2, kind: input, shape index: {}]   ;;  %s315_s3 = inlined_call_operand.hbm [shape: f32[3,256], index: 3, kind: output, shape index: {}]  }
   0x1   :  { %8 = sst [smem:[#allocation3]] %s312_s0 }
   0x2   :  { %9 = vsyncpa [#allocation5], 0  ;;  %s14_s14 = sld [smem:[#allocation3]] }
   0x8   :  { %p186_p0 = scmp.ne.s32.totalorder %s14_s14, 0 }
   0xa   :  { %18 = sbr.rel (%p186_p0) target bundleno = 17 (0x11), region = 13 }
   0xf   :  { %v255_v0 = vmov 0.0  }
  0x10   :  { %19 = vst [vmem:[#allocation4] sm:$0x77] %v255_v0 }
  0x11 PF:  { %s20_s15 = sld [smem:[#allocation3]] }
  0x17   :  { %p187_p1 = scmp.eq.s32.totalorder %s20_s15, 0 }
  0x19   :  { %24 = sbr.rel (%p187_p1) target bundleno = 299 (0x12b), region = 17 }
  0x1e   :  { %v32_v1 = vld [vmem:[%s313_s1 + $0x38] sm:$0xff]  ;;  %v30_v2 = vld [vmem:[%s313_s1 + $0x28] sm:$0xff]  ;;  %v256_v3 = vmov 0   ;;  %v31_v5 = vld [vmem:[%s313_s1 + $0x30] sm:$0xff]  ;;  %v43_v10 = vlaneseq  ;;  %v257_v15 = vmov 1.0   ;;  %vm119_vm14 = vcmask 523264  }
  0x1f   :  { %227 = vset.pattern.permute.xlu1 %v256_v3  ;;  %226 = vset.pattern.permute.xlu0 %v256_v3  ;;  %v28_v4 = vld [vmem:[%s313_s1 + $0x18] sm:$0xff]  ;;  %v29_v6 = vld [vmem:[%s313_s1 + $0x20] sm:$0xff]  ;;  %v27_v7 = vld [vmem:[%s313_s1 + $0x10] sm:$0xff] }
  0x20   :  { %68 = vperm.xlu0 %226, %v32_v1   ;;  %62 = vperm.xlu1 %227, %v30_v2   ;;  %v26_v8 = vld [vmem:[%s313_s1 + $0x8] sm:$0xff]  ;;  %v25_v9 = vld [vmem:[%s313_s1] sm:$0xff]  ;;  %v44_v11 = vand.u32 127, %v43_v10 }
  0x21   :  { %228 = vset.pattern.permute.xlu2 %v256_v3  ;;  %v118_v22 = vld [vmem:[%s314_s2] sm:$0x7] }
  0x22   :  { %56 = vperm.xlu2 %228, %v28_v4   ;;  %v45_v12 = vadd.s32 128, %v44_v11 }
  0x28   :  { %65 = vperm.xlu0 %226, %v31_v5   ;;  %59 = vperm.xlu1 %227, %v29_v6  }
  0x2a   :  { %53 = vperm.xlu2 %228, %v27_v7  }
  0x30   :  { %50 = vperm.xlu0 %226, %v26_v8   ;;  %47 = vperm.xlu1 %227, %v25_v9  }
  0x7c   :  { %v57_v16 = vpop.permute.xlu2 %56 }
  0x7d   :  { %vm76_vm8 = vcmp.eq.s32.totalorder %v44_v11, %v57_v16  ;;  %vm77_vm9 = vcmp.eq.s32.totalorder %v45_v12, %v57_v16 }
  0x84   :  { %v54_v19 = vpop.permute.xlu2 %53 }
  0x85   :  { %vm74_vm10 = vcmp.eq.s32.totalorder %v44_v11, %v54_v19  ;;  %vm75_vm11 = vcmp.eq.s32.totalorder %v45_v12, %v54_v19 }
  0x92   :  { %v69_v13 = vpop.permute.xlu0 %68  ;;  %v63_v14 = vpop.permute.xlu1 %62 }
  0x93   :  { %vm84_vm0 = vcmp.eq.s32.totalorder %v44_v11, %v69_v13  ;;  %vm85_vm1 = vcmp.eq.s32.totalorder %v45_v12, %v69_v13  ;;  %vm80_vm4 = vcmp.eq.s32.totalorder %v44_v11, %v63_v14  ;;  %vm81_vm5 = vcmp.eq.s32.totalorder %v45_v12, %v63_v14 }
  0x94   :  { %204 = vmatpush.msk.msra.mxu0 %vm84_vm0, %v257_v15  ;;  %213 = vmatpush.msk.msra.mxu1 %vm85_vm1, %v257_v15  ;;  %vm166_vm1 = vcmask 1043456  }
  0x9a   :  { %v66_v17 = vpop.permute.xlu0 %65  ;;  %v60_v18 = vpop.permute.xlu1 %59 }
  0x9b   :  { %vm82_vm2 = vcmp.eq.s32.totalorder %v44_v11, %v66_v17  ;;  %vm83_vm3 = vcmp.eq.s32.totalorder %v45_v12, %v66_v17  ;;  %vm78_vm6 = vcmp.eq.s32.totalorder %v44_v11, %v60_v18  ;;  %vm79_vm7 = vcmp.eq.s32.totalorder %v45_v12, %v60_v18 }
  0x9c   :  { %205 = vmatpush.msk.msra.mxu0 %vm82_vm2, %v257_v15  ;;  %214 = vmatpush.msk.msra.mxu1 %vm83_vm3, %v257_v15 }
  0x9e   :  { %206 = vmatpush.msk.msra.mxu0 %vm80_vm4, %v257_v15  ;;  %215 = vmatpush.msk.msra.mxu1 %vm81_vm5, %v257_v15 }
  0xa0   :  { %207 = vmatpush.msk.msra.mxu0 %vm78_vm6, %v257_v15  ;;  %216 = vmatpush.msk.msra.mxu1 %vm79_vm7, %v257_v15 }
  0xa2   :  { %208 = vmatpush.msk.msra.mxu0 %vm76_vm8, %v257_v15  ;;  %217 = vmatpush.msk.msra.mxu1 %vm77_vm9, %v257_v15  ;;  %v51_v20 = vpop.permute.xlu0 %50  ;;  %v48_v21 = vpop.permute.xlu1 %47 }
  0xa3   :  { %vm72_vm12 = vcmp.eq.s32.totalorder %v44_v11, %v51_v20  ;;  %vm73_vm13 = vcmp.eq.s32.totalorder %v45_v12, %v51_v20  ;;  %vm70_vm15 = vcmp.eq.s32.totalorder %v44_v11, %v48_v21  ;;  %vm71_vm0 = vcmp.eq.s32.totalorder %v45_v12, %v48_v21 }
  0xa4   :  { %209 = vmatpush.msk.msra.mxu0 %vm74_vm10, %v257_v15  ;;  %218 = vmatpush.msk.msra.mxu1 %vm75_vm11, %v257_v15 }
  0xa6   :  { %210 = vmatpush.msk.msra.mxu0 %vm72_vm12, %v257_v15  ;;  %219 = vmatpush.msk.msra.mxu1 %vm73_vm13, %v257_v15 }
  0xa8   :  { %211 = vmatpush.msk.msra.mxu0 %vm70_vm15, %v257_v15  ;;  %220 = vmatpush.msk.msra.mxu1 %vm71_vm0, %v257_v15 }
  0xa9   :  { %221 = vmatmul.msk.f32.vlgmr.msra.gmra.mxu1 %vm119_vm14, %v118_v22  ;;  %212 = vmatmul.msk.f32.vlgmr.msra.gmra.mxu0 %vm119_vm14, %v118_v22 }
 0x126   :  { %v160_v23 = vpop.f32.mrf.mxu1  ;;  %v140_v24 = vpop.f32.mrf.mxu0 }
 0x127   :  { %v165_v25 = vrot.slane %v160_v23, 4 }
 0x129   :  { %v167_v26 = vsel %vm166_vm1, %v140_v24, %v165_v25 }
 0x12a   :  { %169 = vst [vmem:[#allocation4] sm:$0x77] %v167_v26 }
 0x12b PF:  { %s177_s7 = sshll.u32 %s315_s3, 4  ;;  %s258_s8 = smov [#allocation4]   ;;  %s178_s7 = int_to_ptr.hbm [resolvable:$true] %s177_s7 }
 0x12c   :  { %s175_s2 = sshll.u32 %s258_s8, 4  ;;  %s176_s2 = int_to_ptr.vmem [resolvable:$true] %s175_s2 }
 0x12d   :  { %180 = dma.vmem_to_hbm [thread:$0]  %s176_s2, 128, %s178_s7, [#allocation5]  }
 0x12e   :  { %253 = dma.done.wait [#allocation5], 128  }
 0x12f   :  { %254 = vsyncadd [#allocation5], 4294967168 }
 0x130   :  { %185 = vsyncpa [#allocation5], 1 }

</bundles_post_ra>
